<compile_context>
chip_gen: v5e
topology: v5e:2x2
jax: 0.10.0
libtpu: 0.0.40
codegen_flags: <defaults>
</compile_context>

<pallas_src>
import functools

import jax
import jax.numpy as jnp
from jax.experimental import pallas as pl
from jax.experimental.pallas import tpu as pltpu

HIDDEN_SIZE = 128
NUM_INPUT_PARAMETERS = 1
NUM_OUTPUT_PARAMETERS = 1
SEQ_LEN_FUTURE = 3
SEQ_LEN_PAST = 30

IN_DIM = SEQ_LEN_PAST * NUM_INPUT_PARAMETERS          # 30
OUT_DIM = SEQ_LEN_FUTURE * NUM_OUTPUT_PARAMETERS      # 3


def mlp_kernel(x_ref, w_in_ref, b_in_ref, w1_ref, b1_ref, w2_ref, b2_ref,
               w_out_ref, b_out_ref, o_ref):
    """Fused 4-layer MLP forward on one (TB, IN_DIM) batch tile.

    f32 input cast to bf16 in-kernel, bf16 MXU operands with f32 accumulation,
    bias + ReLU in f32 on the VPU, direct (TB, OUT_DIM) f32 store.
    """
    x = x_ref[...].astype(jnp.bfloat16)                                  # (TB, 30) bf16

    h = jnp.dot(x, w_in_ref[...], preferred_element_type=jnp.float32)   # (TB, 128) f32
    h = jnp.maximum(h + b_in_ref[...], 0.0)
    # dropout(p=0.3) -> identity in eval mode

    h = jnp.dot(h.astype(jnp.bfloat16), w1_ref[...],
                preferred_element_type=jnp.float32)
    h = jnp.maximum(h + b1_ref[...], 0.0)

    h = jnp.dot(h.astype(jnp.bfloat16), w2_ref[...],
                preferred_element_type=jnp.float32)
    h = jnp.maximum(h + b2_ref[...], 0.0)

    o = jnp.dot(h.astype(jnp.bfloat16), w_out_ref[...],
                preferred_element_type=jnp.float32)                      # (TB, 3) f32
    o_ref[...] = o + b_out_ref[...]


def _round_up(n, m):
    return ((n + m - 1) // m) * m


def _resident_spec(shape):
    """Weight/bias spec: constant index_map -> DMA'd once, stays resident in VMEM."""
    n = len(shape)
    return pl.BlockSpec(shape, lambda i, n=n: (0,) * n)


def prepare_params(params):
    """One-time weight prep: cast matmul operands to bf16, keep biases f32."""
    return dict(
        w_in=params["w_in"].astype(jnp.bfloat16), b_in=params["b_in"],
        w1=params["w1"].astype(jnp.bfloat16), b1=params["b1"],
        w2=params["w2"].astype(jnp.bfloat16), b2=params["b2"],
        w_out=params["w_out"].astype(jnp.bfloat16), b_out=params["b_out"],
    )


@functools.partial(jax.jit, static_argnames=("block_rows",))
def own_mlp_forward(x, p, *, block_rows=1024):
    """x: (B, 30) float32. p: prepared params (see prepare_params). Returns (B, 3) float32."""
    B = x.shape[0]
    # Batch tile: multiple of 16 (bf16 sublane tile); for large B cap at
    # ceil(B/2) so there are always >= 2 grid steps (keeps both v7x TCs fed).
    TB = min(_round_up(block_rows, 16), max(16, _round_up(pl.cdiv(B, 2), 16)))
    TB = min(TB, _round_up(B, 16))
    grid = (pl.cdiv(B, TB),)

    # Advisory cost estimate for the XLA scheduler.
    flops_per_row = 2 * (IN_DIM * HIDDEN_SIZE + 2 * HIDDEN_SIZE * HIDDEN_SIZE
                         + HIDDEN_SIZE * OUT_DIM)
    weight_bytes = 2 * (IN_DIM * HIDDEN_SIZE + 2 * HIDDEN_SIZE * HIDDEN_SIZE
                        + HIDDEN_SIZE * OUT_DIM) + 4 * (3 * HIDDEN_SIZE + OUT_DIM)
    cost = pl.CostEstimate(
        flops=B * flops_per_row,
        transcendentals=0,
        bytes_accessed=B * 4 * (IN_DIM + OUT_DIM) + weight_bytes,
    )

    out = pl.pallas_call(
        mlp_kernel,
        out_shape=jax.ShapeDtypeStruct((B, OUT_DIM), jnp.float32),
        grid=grid,
        in_specs=[
            pl.BlockSpec((TB, IN_DIM), lambda i: (i, 0)),   # x: streamed per tile (f32)
            _resident_spec(p["w_in"].shape), _resident_spec(p["b_in"].shape),
            _resident_spec(p["w1"].shape), _resident_spec(p["b1"].shape),
            _resident_spec(p["w2"].shape), _resident_spec(p["b2"].shape),
            _resident_spec(p["w_out"].shape), _resident_spec(p["b_out"].shape),
        ],
        # Direct lane-narrow output: block last dim (3) equals the full array
        # last dim, so the BlockSpec is legal; 12 B/row writeback, no wrapper slice.
        out_specs=pl.BlockSpec((TB, OUT_DIM), lambda i: (i, 0)),
        compiler_params=pltpu.CompilerParams(
            dimension_semantics=("parallel",)),
        cost_estimate=cost,
    )(x, p["w_in"], p["b_in"], p["w1"], p["b1"], p["w2"], p["b2"],
      p["w_out"], p["b_out"])

    return out


def init_params(key):
    """Deterministic synthetic init matching nn.Linear shapes (stored as (in, out))."""
    ks = jax.random.split(key, 8)

    def lin(kw, kb, fan_in, fan_out):
        bound = 1.0 / jnp.sqrt(fan_in)
        w = jax.random.uniform(kw, (fan_in, fan_out), jnp.float32, -bound, bound)
        b = jax.random.uniform(kb, (1, fan_out), jnp.float32, -bound, bound)
        return w, b

    w_in, b_in = lin(ks[0], ks[1], IN_DIM, HIDDEN_SIZE)
    w1, b1 = lin(ks[2], ks[3], HIDDEN_SIZE, HIDDEN_SIZE)
    w2, b2 = lin(ks[4], ks[5], HIDDEN_SIZE, HIDDEN_SIZE)
    w_out, b_out = lin(ks[6], ks[7], HIDDEN_SIZE, OUT_DIM)
    return dict(w_in=w_in, b_in=b_in, w1=w1, b1=b1, w2=w2, b2=b2,
                w_out=w_out, b_out=b_out)


def reference_forward(x, p):
    """Pure-JAX f32 reference (matches the PyTorch eval-mode forward)."""
    h = jnp.maximum(x @ p["w_in"] + p["b_in"], 0.0)
    h = jnp.maximum(h @ p["w1"] + p["b1"], 0.0)
    h = jnp.maximum(h @ p["w2"] + p["b2"], 0.0)
    return h @ p["w_out"] + p["b_out"]


if __name__ == "__main__":
    key = jax.random.PRNGKey(0)
    k_x, k_p, k_x2 = jax.random.split(key, 3)

    params = init_params(k_p)
    prepped = prepare_params(params)   # bf16 weight cast done once, not per call

    # Small test case (B=8).
    B = 8
    x = jax.random.normal(k_x, (B, IN_DIM), jnp.float32)          # (8, 30)
    out = jax.block_until_ready(own_mlp_forward(x, prepped))
    ref = reference_forward(x, params)
    assert out.shape == (B, OUT_DIM)
    # bf16 matmul operands with f32 accumulation -> loosened tolerance vs f32 ref.
    assert jnp.allclose(out, ref, atol=2e-2, rtol=2e-2)

    # Non-multiple-of-tile batch: verify boundary-block clipping.
    B2 = 13
    x2 = jax.random.normal(k_x2, (B2, IN_DIM), jnp.float32)
    out2 = jax.block_until_ready(own_mlp_forward(x2, prepped))
    ref2 = reference_forward(x2, params)
    assert out2.shape == (B2, OUT_DIM)
    assert jnp.allclose(out2, ref2, atol=2e-2, rtol=2e-2)

    print("KERNEL_OK")
</pallas_src>

<mosaic_0001>
module attributes {stable_mosaic.version = 11 : i64} {
  func.func @mlp_kernel(%arg0: i32, %arg1: memref<16x30xf32, #tpu.memory_space<vmem>>, %arg2: memref<30x128xbf16, #tpu.memory_space<vmem>>, %arg3: memref<1x128xf32, #tpu.memory_space<vmem>>, %arg4: memref<128x128xbf16, #tpu.memory_space<vmem>>, %arg5: memref<1x128xf32, #tpu.memory_space<vmem>>, %arg6: memref<128x128xbf16, #tpu.memory_space<vmem>>, %arg7: memref<1x128xf32, #tpu.memory_space<vmem>>, %arg8: memref<128x3xbf16, #tpu.memory_space<vmem>>, %arg9: memref<1x3xf32, #tpu.memory_space<vmem>>, %arg10: memref<16x3xf32, #tpu.memory_space<vmem>>) attributes {dimension_semantics = [#tpu.dimension_semantics<parallel>], iteration_bounds = array<i64: 1>, scalar_prefetch = 0 : i64, scratch_operands = 0 : i64, tpu.core_type = #tpu.core_type<tc>, window_params = [{transform_indices = @transform_0, window_bounds = array<i64: 16, 30>}, {pipeline_mode = #tpu.pipeline_mode<synchronous>, transform_indices = @transform_1, window_bounds = array<i64: 30, 128>}, {pipeline_mode = #tpu.pipeline_mode<synchronous>, transform_indices = @transform_2, window_bounds = array<i64: 1, 128>}, {pipeline_mode = #tpu.pipeline_mode<synchronous>, transform_indices = @transform_3, window_bounds = array<i64: 128, 128>}, {pipeline_mode = #tpu.pipeline_mode<synchronous>, transform_indices = @transform_4, window_bounds = array<i64: 1, 128>}, {pipeline_mode = #tpu.pipeline_mode<synchronous>, transform_indices = @transform_5, window_bounds = array<i64: 128, 128>}, {pipeline_mode = #tpu.pipeline_mode<synchronous>, transform_indices = @transform_6, window_bounds = array<i64: 1, 128>}, {pipeline_mode = #tpu.pipeline_mode<synchronous>, transform_indices = @transform_7, window_bounds = array<i64: 128, 3>}, {pipeline_mode = #tpu.pipeline_mode<synchronous>, transform_indices = @transform_8, window_bounds = array<i64: 1, 3>}, {transform_indices = @transform_9, window_bounds = array<i64: 16, 3>}]} {
    %c0 = arith.constant 0 : index
    %c0_0 = arith.constant 0 : index
    %0 = vector.load %arg1[%c0, %c0_0] : memref<16x30xf32, #tpu.memory_space<vmem>>, vector<16x30xf32>
    %1 = arith.truncf %0 : vector<16x30xf32> to vector<16x30xbf16>
    %c0_1 = arith.constant 0 : index
    %c0_2 = arith.constant 0 : index
    %2 = vector.load %arg2[%c0_1, %c0_2] : memref<30x128xbf16, #tpu.memory_space<vmem>>, vector<30x128xbf16>
    %cst = arith.constant dense<0.000000e+00> : vector<16x128xf32>
    %3 = tpu.matmul %1, %2, %cst {dimension_numbers = #tpu.dot_dimension_numbers<[1], [0], [0], [1], [0, 0, 1, 1], [], []>} : vector<16x30xbf16>, vector<30x128xbf16>, vector<16x128xf32> -> vector<16x128xf32>
    %c0_3 = arith.constant 0 : index
    %c0_4 = arith.constant 0 : index
    %4 = vector.load %arg3[%c0_3, %c0_4] : memref<1x128xf32, #tpu.memory_space<vmem>>, vector<1x128xf32>
    %5 = vector.broadcast %4 : vector<1x128xf32> to vector<16x128xf32>
    %6 = arith.addf %3, %5 : vector<16x128xf32>
    %cst_5 = arith.constant 0.000000e+00 : f32
    %7 = vector.broadcast %cst_5 : f32 to vector<16x128xf32>
    %8 = arith.maximumf %6, %7 : vector<16x128xf32>
    %9 = arith.truncf %8 : vector<16x128xf32> to vector<16x128xbf16>
    %c0_6 = arith.constant 0 : index
    %c0_7 = arith.constant 0 : index
    %10 = vector.load %arg4[%c0_6, %c0_7] : memref<128x128xbf16, #tpu.memory_space<vmem>>, vector<128x128xbf16>
    %cst_8 = arith.constant dense<0.000000e+00> : vector<16x128xf32>
    %11 = tpu.matmul %9, %10, %cst_8 {dimension_numbers = #tpu.dot_dimension_numbers<[1], [0], [0], [1], [0, 0, 1, 1], [], []>} : vector<16x128xbf16>, vector<128x128xbf16>, vector<16x128xf32> -> vector<16x128xf32>
    %c0_9 = arith.constant 0 : index
    %c0_10 = arith.constant 0 : index
    %12 = vector.load %arg5[%c0_9, %c0_10] : memref<1x128xf32, #tpu.memory_space<vmem>>, vector<1x128xf32>
    %13 = vector.broadcast %12 : vector<1x128xf32> to vector<16x128xf32>
    %14 = arith.addf %11, %13 : vector<16x128xf32>
    %cst_11 = arith.constant 0.000000e+00 : f32
    %15 = vector.broadcast %cst_11 : f32 to vector<16x128xf32>
    %16 = arith.maximumf %14, %15 : vector<16x128xf32>
    %17 = arith.truncf %16 : vector<16x128xf32> to vector<16x128xbf16>
    %c0_12 = arith.constant 0 : index
    %c0_13 = arith.constant 0 : index
    %18 = vector.load %arg6[%c0_12, %c0_13] : memref<128x128xbf16, #tpu.memory_space<vmem>>, vector<128x128xbf16>
    %cst_14 = arith.constant dense<0.000000e+00> : vector<16x128xf32>
    %19 = tpu.matmul %17, %18, %cst_14 {dimension_numbers = #tpu.dot_dimension_numbers<[1], [0], [0], [1], [0, 0, 1, 1], [], []>} : vector<16x128xbf16>, vector<128x128xbf16>, vector<16x128xf32> -> vector<16x128xf32>
    %c0_15 = arith.constant 0 : index
    %c0_16 = arith.constant 0 : index
    %20 = vector.load %arg7[%c0_15, %c0_16] : memref<1x128xf32, #tpu.memory_space<vmem>>, vector<1x128xf32>
    %21 = vector.broadcast %20 : vector<1x128xf32> to vector<16x128xf32>
    %22 = arith.addf %19, %21 : vector<16x128xf32>
    %cst_17 = arith.constant 0.000000e+00 : f32
    %23 = vector.broadcast %cst_17 : f32 to vector<16x128xf32>
    %24 = arith.maximumf %22, %23 : vector<16x128xf32>
    %25 = arith.truncf %24 : vector<16x128xf32> to vector<16x128xbf16>
    %c0_18 = arith.constant 0 : index
    %c0_19 = arith.constant 0 : index
    %26 = vector.load %arg8[%c0_18, %c0_19] : memref<128x3xbf16, #tpu.memory_space<vmem>>, vector<128x3xbf16>
    %cst_20 = arith.constant dense<0.000000e+00> : vector<16x3xf32>
    %27 = tpu.matmul %25, %26, %cst_20 {dimension_numbers = #tpu.dot_dimension_numbers<[1], [0], [0], [1], [0, 0, 1, 1], [], []>} : vector<16x128xbf16>, vector<128x3xbf16>, vector<16x3xf32> -> vector<16x3xf32>
    %c0_21 = arith.constant 0 : index
    %c0_22 = arith.constant 0 : index
    %28 = vector.load %arg9[%c0_21, %c0_22] : memref<1x3xf32, #tpu.memory_space<vmem>>, vector<1x3xf32>
    %29 = vector.broadcast %28 : vector<1x3xf32> to vector<16x3xf32>
    %30 = arith.addf %27, %29 : vector<16x3xf32>
    %c0_23 = arith.constant 0 : index
    %c0_24 = arith.constant 0 : index
    %31 = vector.load %arg10[%c0_23, %c0_24] : memref<16x3xf32, #tpu.memory_space<vmem>>, vector<16x3xf32>
    tpu.vector_store %arg10[%c0_23, %c0_24], %30 {strides = array<i32>} : memref<16x3xf32, #tpu.memory_space<vmem>>, vector<16x3xf32>,
    return
  }
  func.func @transform_0(%arg0: i32) -> (i32, i32) {
    %c0_i32 = arith.constant 0 : i32
    %c0_i32_0 = arith.constant 0 : i32
    return %arg0, %c0_i32 : i32, i32
  }
  func.func @transform_1(%arg0: i32) -> (i32, i32) {
    %c0_i32 = arith.constant 0 : i32
    %c0_i32_0 = arith.constant 0 : i32
    %c0_i32_1 = arith.constant 0 : i32
    return %c0_i32, %c0_i32_0 : i32, i32
  }
  func.func @transform_2(%arg0: i32) -> (i32, i32) {
    %c0_i32 = arith.constant 0 : i32
    %c0_i32_0 = arith.constant 0 : i32
    %c0_i32_1 = arith.constant 0 : i32
    return %c0_i32, %c0_i32_0 : i32, i32
  }
  func.func @transform_3(%arg0: i32) -> (i32, i32) {
    %c0_i32 = arith.constant 0 : i32
    %c0_i32_0 = arith.constant 0 : i32
    %c0_i32_1 = arith.constant 0 : i32
    return %c0_i32, %c0_i32_0 : i32, i32
  }
  func.func @transform_4(%arg0: i32) -> (i32, i32) {
    %c0_i32 = arith.constant 0 : i32
    %c0_i32_0 = arith.constant 0 : i32
    %c0_i32_1 = arith.constant 0 : i32
    return %c0_i32, %c0_i32_0 : i32, i32
  }
  func.func @transform_5(%arg0: i32) -> (i32, i32) {
    %c0_i32 = arith.constant 0 : i32
    %c0_i32_0 = arith.constant 0 : i32
    %c0_i32_1 = arith.constant 0 : i32
    return %c0_i32, %c0_i32_0 : i32, i32
  }
  func.func @transform_6(%arg0: i32) -> (i32, i32) {
    %c0_i32 = arith.constant 0 : i32
    %c0_i32_0 = arith.constant 0 : i32
    %c0_i32_1 = arith.constant 0 : i32
    return %c0_i32, %c0_i32_0 : i32, i32
  }
  func.func @transform_7(%arg0: i32) -> (i32, i32) {
    %c0_i32 = arith.constant 0 : i32
    %c0_i32_0 = arith.constant 0 : i32
    %c0_i32_1 = arith.constant 0 : i32
    return %c0_i32, %c0_i32_0 : i32, i32
  }
  func.func @transform_8(%arg0: i32) -> (i32, i32) {
    %c0_i32 = arith.constant 0 : i32
    %c0_i32_0 = arith.constant 0 : i32
    %c0_i32_1 = arith.constant 0 : i32
    return %c0_i32, %c0_i32_0 : i32, i32
  }
  func.func @transform_9(%arg0: i32) -> (i32, i32) {
    %c0_i32 = arith.constant 0 : i32
    %c0_i32_0 = arith.constant 0 : i32
    return %arg0, %c0_i32 : i32, i32
  }
}

</mosaic_0001>

<bundles_post_ra>
// kernel: own_mlp_forward.1
= control target key start
LH: loop header
LB: loop body
LE: loop exit
PB: predicated region body
PF: predicated region fallthrough
CT: control target
= control target key end

     0   :  { %14 = vsyncpa [#allocation3], 0  ;;  %s772_s0 = inlined_call_operand.hbm [shape: f32[8,30], index: 0, kind: input, shape index: {}]   ;;  %s773_s1 = inlined_call_operand.hbm [shape: bf16[30,128], index: 1, kind: input, shape index: {}]   ;;  %s774_s2 = inlined_call_operand.vmem [shape: f32[1,128], index: 2, kind: input, shape index: {}]   ;;  %s775_s3 = inlined_call_operand.vmem [shape: bf16[128,128], index: 3, kind: input, shape index: {}]   ;;  %s776_s4 = inlined_call_operand.vmem [shape: f32[1,128], index: 4, kind: input, shape index: {}]   ;;  %s777_s5 = inlined_call_operand.hbm [shape: bf16[128,128], index: 5, kind: input, shape index: {}]   ;;  %s778_s6 = inlined_call_operand.vmem [shape: f32[1,128], index: 6, kind: input, shape index: {}]   ;;  %s779_s7 = inlined_call_operand.vmem [shape: bf16[128,3], index: 7, kind: input, shape index: {}]   ;;  %s780_s8 = inlined_call_operand.vmem [shape: f32[1,3], index: 8, kind: input, shape index: {}]   ;;  %s781_s9 = inlined_call_operand.vmem [shape: f32[8,3], index: 9, kind: output, shape index: {}]  }
   0x1   :  { %15 = vsyncpa [#allocation5], 0  ;;  %s33_s11 = sshll.u32 %s773_s1, 4  ;;  %s34_s11 = int_to_ptr.hbm [resolvable:$true] %s33_s11 }
   0x2   :  { %19 = vsyncadd [#allocation3], 128  ;;  %s643_s12 = smov [#allocation4]   ;;  %s20_s16 = sshll.u32 %s772_s0, 4  ;;  %s21_s16 = int_to_ptr.hbm [resolvable:$true] %s20_s16 }
   0x3   :  { %s35_s13 = sshll.u32 %s643_s12, 4  ;;  %s644_s17 = smov 64   ;;  %s36_s13 = int_to_ptr.vmem [resolvable:$true] %s35_s13 }
   0x4   :  { %s645_s18 = smov 4   ;;  %s646_s19 = smov [#allocation2]  }
   0x5   :  { %41 = dma.hbm_to_vmem [thread:$0]  %s34_s11, 256, %s36_s13, [#allocation5], %s644_s17, %s644_s17, %s645_s18  }
   0x6   :  { %s22_s20 = sshll.u32 %s646_s19, 4  ;;  %s647_s21 = smov 128   ;;  %s23_s20 = int_to_ptr.vmem [resolvable:$true] %s22_s20 }
   0x7   :  { %s648_s22 = smov 8   ;;  %s52_s24 = sshll.u32 %s777_s5, 4  ;;  %s53_s24 = int_to_ptr.hbm [resolvable:$true] %s52_s24 }
   0x8   :  { %28 = dma.hbm_to_vmem [thread:$0]  %s21_s16, 128, %s23_s20, [#allocation3], %s647_s21, %s647_s21, %s648_s22  }
   0x9   :  { %s649_s25 = smov [#allocation6]  }
   0xa   :  { %s54_s26 = sshll.u32 %s649_s25, 4  ;;  %s55_s26 = int_to_ptr.vmem [resolvable:$true] %s54_s26 }
   0xb   :  { %60 = dma.hbm_to_vmem [thread:$0]  %s53_s24, 1024, %s55_s26, [#allocation5], %s644_s17, %s644_s17, %s645_s18  }
   0xc   :  { %639 = dma.done.wait [#allocation3], 256  }
   0xd   :  { %640 = vsyncadd [#allocation3], 4294967040 }
   0xe   :  { %641 = dma.done.wait [#allocation5], 1280  }
   0xf   :  { %642 = vsyncadd [#allocation5], 4294966016  ;;  %v431_v0 = vld [vmem:[#allocation4 + $0x8] sm:$0xf]  ;;  %v531_v1 = vld [vmem:[#allocation4 + $0x8] sm:$0x70] }
  0x10   :  { %vm106_vm0 = vcmask 1046528   ;;  %v432_v2 = vor.u32 %v531_v1, %v431_v0  ;;  %v539_v3 = vld [vmem:[%s775_s3 + $0x38] sm:$0xff]  ;;  %v530_v4 = vld [vmem:[#allocation4] sm:$0xff]  ;;  %v80_v5 = vld [vmem:[#allocation2] sm:$0xff]  ;;  %vm102_vm1 = vcmask 244736   ;;  %vm379_vm2 = vcmask 23552  }
  0x11   :  { %v81_v7 = vld [vmem:[#allocation2 + $0x8] sm:$0xff]  ;;  %195 = vmatpush.bf16.msra.mxu1 %v539_v3  ;;  %v538_v8 = vld [vmem:[%s775_s3 + $0x30] sm:$0xff]  ;;  %v536_v11 = vld [vmem:[%s775_s3 + $0x20] sm:$0xff] }
  0x12   :  { %v108_v6 = vsel %vm106_vm0, %v432_v2, 0  ;;  %v82_v9 = vpack.c.bf16 %v81_v7, %v80_v5  ;;  %v537_v10 = vld [vmem:[%s775_s3 + $0x28] sm:$0xff]  ;;  %v535_v12 = vld [vmem:[%s775_s3 + $0x18] sm:$0xff]  ;;  %v534_v13 = vld [vmem:[%s775_s3 + $0x10] sm:$0xff] }
  0x13   :  { %116 = vmatpush.bf16.msra.mxu0 %v108_v6  ;;  %v533_v14 = vld [vmem:[%s775_s3 + $0x8] sm:$0xff]  ;;  %v532_v15 = vld [vmem:[%s775_s3] sm:$0xff]  ;;  %v547_v16 = vld [vmem:[#allocation6 + $0x38] sm:$0xff] }
  0x14   :  { %280 = vmatpush.bf16.msra.mxu2 %v547_v16  ;;  %v546_v17 = vld [vmem:[#allocation6 + $0x30] sm:$0xff]  ;;  %v545_v18 = vld [vmem:[#allocation6 + $0x28] sm:$0xff]  ;;  %v544_v19 = vld [vmem:[#allocation6 + $0x20] sm:$0xff] }
  0x15   :  { %196 = vmatpush.bf16.msra.mxu1 %v538_v8  ;;  %v563_v21 = vld [vmem:[%s774_s2] ss:$0 sm:$0xff]  ;;  %v543_v28 = vld [vmem:[#allocation6 + $0x18] sm:$0xff]  ;;  %v542_v29 = vld [vmem:[#allocation6 + $0x10] sm:$0xff] }
  0x16   :  { %v541_v30 = vld [vmem:[#allocation6 + $0x8] sm:$0xff]  ;;  %v540_v31 = vld [vmem:[#allocation6] sm:$0xff]  ;;  %v555_v32 = vld [vmem:[%s779_s7 + $0x38] sm:$0xff] }
  0x17   :  { %117 = vmatpush.bf16.msra.mxu0 %v530_v4  ;;  %365 = vmatpush.bf16.msra.mxu3 %v555_v32  ;;  %v554_v33 = vld [vmem:[%s779_s7 + $0x30] sm:$0xff]  ;;  %v553_v34 = vld [vmem:[%s779_s7 + $0x28] sm:$0xff]  ;;  %v552_v35 = vld [vmem:[%s779_s7 + $0x20] sm:$0xff] }
  0x18   :  { %281 = vmatpush.bf16.msra.mxu2 %v546_v17  ;;  %v564_v37 = vld [vmem:[%s776_s4] ss:$0 sm:$0xff]  ;;  %v551_v44 = vld [vmem:[%s779_s7 + $0x18] sm:$0xff]  ;;  %v550_v45 = vld [vmem:[%s779_s7 + $0x10] sm:$0xff] }
  0x19   :  { %197 = vmatpush.bf16.msra.mxu1 %v537_v10  ;;  %v549_v46 = vld [vmem:[%s779_s7 + $0x8] sm:$0xff]  ;;  %v548_v47 = vld [vmem:[%s779_s7] sm:$0xff] }
  0x1a   :  { %433 = vmatmul.msk.bf16.vlgmr.msra.gmra.mxu0 %vm102_vm1, %v82_v9  ;;  %v565_v49 = vld [vmem:[%s778_s6] ss:$0 sm:$0xff] }
  0x1b   :  { %366 = vmatpush.bf16.msra.mxu3 %v554_v33  ;;  %v566_v56 = vld [vmem:[%s780_s8] ss:$0 sm:$0xff] }
  0x1c   :  { %282 = vmatpush.bf16.msra.mxu2 %v545_v18 }
  0x1d   :  { %198 = vmatpush.bf16.msra.mxu1 %v536_v11 }
  0x1f   :  { %367 = vmatpush.bf16.msra.mxu3 %v553_v34 }
  0x20   :  { %283 = vmatpush.bf16.msra.mxu2 %v544_v19 }
  0x21   :  { %199 = vmatpush.bf16.msra.mxu1 %v535_v12 }
  0x23   :  { %368 = vmatpush.bf16.msra.mxu3 %v552_v35 }
  0x24   :  { %284 = vmatpush.bf16.msra.mxu2 %v543_v28 }
  0x25   :  { %200 = vmatpush.bf16.msra.mxu1 %v534_v13 }
  0x27   :  { %369 = vmatpush.bf16.msra.mxu3 %v551_v44 }
  0x28   :  { %285 = vmatpush.bf16.msra.mxu2 %v542_v29 }
  0x29   :  { %201 = vmatpush.bf16.msra.mxu1 %v533_v14 }
  0x2b   :  { %370 = vmatpush.bf16.msra.mxu3 %v550_v45 }
  0x2c   :  { %286 = vmatpush.bf16.msra.mxu2 %v541_v30 }
  0x2d   :  { %202 = vmatpush.bf16.msra.mxu1 %v532_v15 }
  0x2f   :  { %371 = vmatpush.bf16.msra.mxu3 %v549_v46 }
  0x30   :  { %287 = vmatpush.bf16.msra.mxu2 %v540_v31 }
  0x33   :  { %372 = vmatpush.bf16.msra.mxu3 %v548_v47 }
  0x97   :  { %v119_v20 = vpop.f32.mrf.mxu0 }
  0x98   :  { %v120_v22 = vadd.f32 %v563_v21, %v119_v20 }
  0x9a   :  { %v124_v25 = vmax.f32 %v120_v22, 0.0 }
  0x9f   :  { %v121_v23 = vpop.f32.mrf.mxu0 }
  0xa0   :  { %v122_v24 = vadd.f32 %v563_v21, %v121_v23 }
  0xa2   :  { %v125_v26 = vmax.f32 %v122_v24, 0.0 }
  0xa4   :  { %v126_v27 = vpack.c.bf16 %v125_v26, %v124_v25 }
  0xa6   :  { %203 = vmatmul.bf16.vlgmr.msra.gmra.mxu1 %v126_v27 }
 0x123   :  { %v204_v36 = vpop.f32.mrf.mxu1 }
 0x124   :  { %v205_v38 = vadd.f32 %v564_v37, %v204_v36 }
 0x126   :  { %v209_v41 = vmax.f32 %v205_v38, 0.0 }
 0x12b   :  { %v206_v39 = vpop.f32.mrf.mxu1 }
 0x12c   :  { %v207_v40 = vadd.f32 %v564_v37, %v206_v39 }
 0x12e   :  { %v210_v42 = vmax.f32 %v207_v40, 0.0 }
 0x130   :  { %v211_v43 = vpack.c.bf16 %v210_v42, %v209_v41 }
 0x132   :  { %288 = vmatmul.bf16.vlgmr.msra.gmra.mxu2 %v211_v43 }
 0x1b5   :  { %v289_v48 = vpop.f32.mrf.mxu2 }
 0x1b6   :  { %v290_v50 = vadd.f32 %v565_v49, %v289_v48 }
 0x1b8   :  { %v294_v53 = vmax.f32 %v290_v50, 0.0 }
 0x1bd   :  { %v291_v51 = vpop.f32.mrf.mxu2 }
 0x1be   :  { %v292_v52 = vadd.f32 %v565_v49, %v291_v51 }
 0x1c0   :  { %v295_v54 = vmax.f32 %v292_v52, 0.0 }
 0x1c2   :  { %v296_v55 = vpack.c.bf16 %v295_v54, %v294_v53 }
 0x1c4   :  { %373 = vmatmul.bf16.vlgmr.msra.gmra.mxu3 %v296_v55 }
 0x247   :  { %v374_v57 = vpop.f32.mrf.mxu3 }
 0x248   :  { %v375_v58 = vadd.f32 %v566_v56, %v374_v57 }
 0x24a   :  { %380 = vst.msk [vmem:[#allocation7] sm:$0xff] %vm379_vm2, %v375_v58 }
 0x24f   :  { %v376_v59 = vpop.f32.mrf.mxu3 }
 0x251   :  { %v412_v60 = vld [vmem:[#allocation7] sm:$0xff] }
 0x252   :  { %413 = vst [vmem:[%s781_s9] sm:$0xff] %v412_v60 }
 0x253   :  { %419 = vsyncpa [#allocation3], 1 }
 0x254   :  { %420 = vsyncpa [#allocation5], 1 }

</bundles_post_ra>
